<compile_context>
chip_gen: v7x
topology: tpu7x:2x2x1
jax: 0.10.0
libtpu: 0.0.40
codegen_flags: <defaults>
</compile_context>

<pallas_src>
import jax
import jax.numpy as jnp
from jax.experimental import pallas as pl
from jax.experimental.pallas import tpu as pltpu

_LANE = 128


def _soft_clamp(y):
    # LeakyReLU(0.1)
    y = jnp.where(y >= 0.0, y, 0.1 * y)
    # -LeakyReLU(0.1)(-y + 1) + 1
    z = 1.0 - y
    z = jnp.where(z >= 0.0, z, 0.1 * z)
    return 1.0 - z


def _regressor_head_kernel(x_ref, w_ref, b_ref, o_ref):
    # x_ref: (TB, H) VMEM tile, w_ref: (1, H) VMEM (grid-resident),
    # b_ref: (1, 1) SMEM scalar, o_ref: (TB, 1) VMEM.
    tb, H = x_ref.shape
    n_full = H // _LANE
    rem = H - n_full * _LANE

    # VPU chunk accumulation over 128-lane chunks; single XLU reduce at the end.
    # Casts to f32 are done per chunk so a bf16 tile never materializes a
    # whole-tile f32 copy in VMEM.
    if n_full:
        acc = (x_ref[:, : _LANE].astype(jnp.float32)
               * w_ref[:, : _LANE].astype(jnp.float32))
        for k in range(1, n_full):
            sl = pl.ds(k * _LANE, _LANE)
            acc = acc + (x_ref[:, sl].astype(jnp.float32)
                         * w_ref[:, sl].astype(jnp.float32))
        y = jnp.sum(acc, axis=-1, keepdims=True)          # one cross-lane reduce
    else:
        y = jnp.zeros((tb, 1), jnp.float32)

    if rem:  # H not a multiple of 128 (not hit for 768/1024; kept for safety)
        sl = pl.ds(n_full * _LANE, rem)
        y = y + jnp.sum(x_ref[:, sl].astype(jnp.float32)
                        * w_ref[:, sl].astype(jnp.float32),
                        axis=-1, keepdims=True)

    y = y + b_ref[0, 0]
    o_ref[...] = _soft_clamp(y).astype(o_ref.dtype)


def regressor_head(x, weight, bias, *, block_b=2048, min_pallas_batch=512):
    """x: (B, H) f32/bf16, weight: (1, H), bias: (1,) -> (B, 1) in x.dtype."""
    B, H = x.shape
    assert weight.shape == (1, H), weight.shape

    if B < min_pallas_batch:
        # Tiny batches: pallas_call launch + per-step overhead dominates; let
        # XLA's fused matmul+elementwise handle it.
        y = (x.astype(jnp.float32) @ weight.astype(jnp.float32).T
             + bias.astype(jnp.float32)[None, :])
        return _soft_clamp(y).astype(x.dtype)

    x_item = jnp.dtype(x.dtype).itemsize
    sublane = {4: 8, 2: 16, 1: 32}.get(x_item, 8)

    # Batch tile: <= block_b rows, rounded up to the dtype-appropriate sublane
    # multiple.  No padding of the batch itself — partial last block is masked.
    tb = max(min(block_b, B), sublane)
    tb = ((tb + sublane - 1) // sublane) * sublane
    grid = pl.cdiv(B, tb)

    b2 = bias.reshape(1, 1).astype(jnp.float32)
    out_dtype = x.dtype

    cost = pl.CostEstimate(
        flops=2 * B * H,
        transcendentals=0,
        bytes_accessed=(B * H * x_item
                        + H * jnp.dtype(weight.dtype).itemsize
                        + B * jnp.dtype(out_dtype).itemsize),
    )

    return pl.pallas_call(
        _regressor_head_kernel,
        out_shape=jax.ShapeDtypeStruct((B, 1), out_dtype),
        grid_spec=pltpu.PrefetchScalarGridSpec(
            num_scalar_prefetch=0,
            grid=(grid,),
            in_specs=[
                pl.BlockSpec((tb, H), lambda i: (i, 0)),            # x: batch-tiled
                pl.BlockSpec((1, H), lambda i: (0, 0)),             # weight: resident
                pl.BlockSpec(memory_space=pltpu.MemorySpace.SMEM),  # bias scalar
            ],
            out_specs=pl.BlockSpec((tb, 1), lambda i: (i, 0)),
        ),
        compiler_params=pltpu.CompilerParams(
            dimension_semantics=("parallel",)),
        cost_estimate=cost,
    )(x, weight, b2)


def _reference(x, weight, bias):
    y = (x.astype(jnp.float32) @ weight.T.astype(jnp.float32)
         + bias.astype(jnp.float32)[None, :])
    return _soft_clamp(y)


if __name__ == "__main__":
    IN_DIM = 768   # model_type == 'base'

    key = jax.random.PRNGKey(0)
    kx, kw, kb = jax.random.split(key, 3)

    weight = jax.random.normal(kw, (1, IN_DIM), dtype=jnp.float32) * 0.02
    bias = jax.random.normal(kb, (1,), dtype=jnp.float32) * 0.02

    # 1) Small batch, Pallas path forced (min_pallas_batch=0), single full tile.
    x8 = jax.random.normal(kx, (8, IN_DIM), dtype=jnp.float32)
    out8 = jax.block_until_ready(
        regressor_head(x8, weight, bias, block_b=8, min_pallas_batch=0))
    ref8 = _reference(x8, weight, bias)
    assert out8.shape == (8, 1), out8.shape
    assert jnp.allclose(out8, ref8, atol=1e-5, rtol=1e-5), "B=8 mismatch"

    # 2) Ragged batch, partial last block via masking (no wrapper-side pad).
    x13 = jax.random.normal(kx, (13, IN_DIM), dtype=jnp.float32)
    out13 = jax.block_until_ready(
        regressor_head(x13, weight, bias, block_b=8, min_pallas_batch=0))
    ref13 = _reference(x13, weight, bias)
    assert out13.shape == (13, 1), out13.shape
    assert jnp.allclose(out13, ref13, atol=1e-5, rtol=1e-5), "B=13 mismatch"

    # 3) Multi-tile grid with a partial last tile (200 rows, 64-row tiles).
    x200 = jax.random.normal(kx, (200, IN_DIM), dtype=jnp.float32)
    out200 = jax.block_until_ready(
        regressor_head(x200, weight, bias, block_b=64, min_pallas_batch=0))
    ref200 = _reference(x200, weight, bias)
    assert out200.shape == (200, 1), out200.shape
    assert jnp.allclose(out200, ref200, atol=1e-5, rtol=1e-5), "B=200 mismatch"

    # 4) bf16 input path (16-row sublane rounding, per-chunk f32 casts).
    xbf = jax.random.normal(kx, (64, IN_DIM), dtype=jnp.float32)
    outbf = jax.block_until_ready(
        regressor_head(xbf.astype(jnp.bfloat16), weight, bias,
                       block_b=64, min_pallas_batch=0))
    refbf = _reference(xbf, weight, bias)
    assert outbf.shape == (64, 1), outbf.shape
    assert jnp.allclose(outbf.astype(jnp.float32), refbf, atol=2e-2), "bf16 mismatch"

    # 5) Default small-batch fallback (pure-JAX path, no pallas_call).
    outfb = jax.block_until_ready(regressor_head(x8, weight, bias))
    assert jnp.allclose(outfb, ref8, atol=1e-5, rtol=1e-5), "fallback mismatch"

    print("KERNEL_OK")
</pallas_src>

<mosaic_0001>
module attributes {stable_mosaic.version = 11 : i64} {
  func.func @_regressor_head_kernel(%arg0: i32, %arg1: memref<8x768xf32, #tpu.memory_space<vmem>>, %arg2: memref<1x768xf32, #tpu.memory_space<vmem>>, %arg3: memref<1x1xf32, #tpu.memory_space<smem>>, %arg4: memref<8x1xf32, #tpu.memory_space<vmem>>) attributes {dimension_semantics = [#tpu.dimension_semantics<parallel>], iteration_bounds = array<i64: 1>, scalar_prefetch = 0 : i64, scratch_operands = 0 : i64, tpu.core_type = #tpu.core_type<tc>, window_params = [{transform_indices = @transform_0, window_bounds = array<i64: 8, 768>}, {pipeline_mode = #tpu.pipeline_mode<synchronous>, transform_indices = @transform_1, window_bounds = array<i64: 1, 768>}, {transform_indices = @transform_2, window_bounds = array<i64: 1, 1>}, {transform_indices = @transform_3, window_bounds = array<i64: 8, 1>}]} {
    %c0 = arith.constant 0 : index
    %c0_0 = arith.constant 0 : index
    %0 = vector.load %arg1[%c0, %c0_0] : memref<8x768xf32, #tpu.memory_space<vmem>>, vector<8x128xf32>
    %c0_1 = arith.constant 0 : index
    %c0_2 = arith.constant 0 : index
    %1 = vector.load %arg2[%c0_1, %c0_2] : memref<1x768xf32, #tpu.memory_space<vmem>>, vector<1x128xf32>
    %2 = vector.broadcast %1 : vector<1x128xf32> to vector<8x128xf32>
    %3 = arith.mulf %0, %2 : vector<8x128xf32>
    %c0_3 = arith.constant 0 : index
    %c128 = arith.constant 128 : index
    %4 = vector.load %arg1[%c0_3, %c128] : memref<8x768xf32, #tpu.memory_space<vmem>>, vector<8x128xf32>
    %c0_4 = arith.constant 0 : index
    %c128_5 = arith.constant 128 : index
    %5 = vector.load %arg2[%c0_4, %c128_5] : memref<1x768xf32, #tpu.memory_space<vmem>>, vector<1x128xf32>
    %6 = vector.broadcast %5 : vector<1x128xf32> to vector<8x128xf32>
    %7 = arith.mulf %4, %6 : vector<8x128xf32>
    %8 = arith.addf %3, %7 : vector<8x128xf32>
    %c0_6 = arith.constant 0 : index
    %c256 = arith.constant 256 : index
    %9 = vector.load %arg1[%c0_6, %c256] : memref<8x768xf32, #tpu.memory_space<vmem>>, vector<8x128xf32>
    %c0_7 = arith.constant 0 : index
    %c256_8 = arith.constant 256 : index
    %10 = vector.load %arg2[%c0_7, %c256_8] : memref<1x768xf32, #tpu.memory_space<vmem>>, vector<1x128xf32>
    %11 = vector.broadcast %10 : vector<1x128xf32> to vector<8x128xf32>
    %12 = arith.mulf %9, %11 : vector<8x128xf32>
    %13 = arith.addf %8, %12 : vector<8x128xf32>
    %c0_9 = arith.constant 0 : index
    %c384 = arith.constant 384 : index
    %14 = vector.load %arg1[%c0_9, %c384] : memref<8x768xf32, #tpu.memory_space<vmem>>, vector<8x128xf32>
    %c0_10 = arith.constant 0 : index
    %c384_11 = arith.constant 384 : index
    %15 = vector.load %arg2[%c0_10, %c384_11] : memref<1x768xf32, #tpu.memory_space<vmem>>, vector<1x128xf32>
    %16 = vector.broadcast %15 : vector<1x128xf32> to vector<8x128xf32>
    %17 = arith.mulf %14, %16 : vector<8x128xf32>
    %18 = arith.addf %13, %17 : vector<8x128xf32>
    %c0_12 = arith.constant 0 : index
    %c512 = arith.constant 512 : index
    %19 = vector.load %arg1[%c0_12, %c512] : memref<8x768xf32, #tpu.memory_space<vmem>>, vector<8x128xf32>
    %c0_13 = arith.constant 0 : index
    %c512_14 = arith.constant 512 : index
    %20 = vector.load %arg2[%c0_13, %c512_14] : memref<1x768xf32, #tpu.memory_space<vmem>>, vector<1x128xf32>
    %21 = vector.broadcast %20 : vector<1x128xf32> to vector<8x128xf32>
    %22 = arith.mulf %19, %21 : vector<8x128xf32>
    %23 = arith.addf %18, %22 : vector<8x128xf32>
    %c0_15 = arith.constant 0 : index
    %c640 = arith.constant 640 : index
    %24 = vector.load %arg1[%c0_15, %c640] : memref<8x768xf32, #tpu.memory_space<vmem>>, vector<8x128xf32>
    %c0_16 = arith.constant 0 : index
    %c640_17 = arith.constant 640 : index
    %25 = vector.load %arg2[%c0_16, %c640_17] : memref<1x768xf32, #tpu.memory_space<vmem>>, vector<1x128xf32>
    %26 = vector.broadcast %25 : vector<1x128xf32> to vector<8x128xf32>
    %27 = arith.mulf %24, %26 : vector<8x128xf32>
    %28 = arith.addf %23, %27 : vector<8x128xf32>
    %cst = arith.constant dense<0.000000e+00> : vector<8xf32>
    %29 = vector.multi_reduction <add>, %28, %cst [1] : vector<8x128xf32> to vector<8xf32>
    %30 = vector.shape_cast %29 : vector<8xf32> to vector<8x1xf32>
    %c0_18 = arith.constant 0 : index
    %c0_19 = arith.constant 0 : index
    %31 = memref.load %arg3[%c0_18, %c0_19] : memref<1x1xf32, #tpu.memory_space<smem>>
    %32 = vector.broadcast %31 : f32 to vector<8x1xf32>
    %33 = arith.addf %30, %32 : vector<8x1xf32>
    %cst_20 = arith.constant 0.000000e+00 : f32
    %34 = vector.broadcast %cst_20 : f32 to vector<8x1xf32>
    %35 = arith.cmpf oge, %33, %34 : vector<8x1xf32>
    %cst_21 = arith.constant 1.000000e-01 : f32
    %36 = vector.broadcast %cst_21 : f32 to vector<8x1xf32>
    %37 = arith.mulf %36, %33 : vector<8x1xf32>
    %38 = arith.select %35, %33, %37 : vector<8x1xi1>, vector<8x1xf32>
    %cst_22 = arith.constant 1.000000e+00 : f32
    %39 = vector.broadcast %cst_22 : f32 to vector<8x1xf32>
    %40 = arith.subf %39, %38 : vector<8x1xf32>
    %cst_23 = arith.constant 0.000000e+00 : f32
    %41 = vector.broadcast %cst_23 : f32 to vector<8x1xf32>
    %42 = arith.cmpf oge, %40, %41 : vector<8x1xf32>
    %cst_24 = arith.constant 1.000000e-01 : f32
    %43 = vector.broadcast %cst_24 : f32 to vector<8x1xf32>
    %44 = arith.mulf %43, %40 : vector<8x1xf32>
    %45 = arith.select %42, %40, %44 : vector<8x1xi1>, vector<8x1xf32>
    %cst_25 = arith.constant 1.000000e+00 : f32
    %46 = vector.broadcast %cst_25 : f32 to vector<8x1xf32>
    %47 = arith.subf %46, %45 : vector<8x1xf32>
    %c0_26 = arith.constant 0 : index
    %c0_27 = arith.constant 0 : index
    %48 = vector.load %arg4[%c0_26, %c0_27] : memref<8x1xf32, #tpu.memory_space<vmem>>, vector<8x1xf32>
    tpu.vector_store %arg4[%c0_26, %c0_27], %47 {strides = array<i32>} : memref<8x1xf32, #tpu.memory_space<vmem>>, vector<8x1xf32>,
    return
  }
  func.func @transform_0(%arg0: i32) -> (i32, i32) {
    %c0_i32 = arith.constant 0 : i32
    %c0_i32_0 = arith.constant 0 : i32
    return %arg0, %c0_i32 : i32, i32
  }
  func.func @transform_1(%arg0: i32) -> (i32, i32) {
    %c0_i32 = arith.constant 0 : i32
    %c0_i32_0 = arith.constant 0 : i32
    %c0_i32_1 = arith.constant 0 : i32
    return %c0_i32, %c0_i32_0 : i32, i32
  }
  func.func @transform_2(%arg0: i32) -> (i32, i32) {
    %c0_i32 = arith.constant 0 : i32
    %c0_i32_0 = arith.constant 0 : i32
    %c0_i32_1 = arith.constant 0 : i32
    return %c0_i32, %c0_i32_0 : i32, i32
  }
  func.func @transform_3(%arg0: i32) -> (i32, i32) {
    %c0_i32 = arith.constant 0 : i32
    %c0_i32_0 = arith.constant 0 : i32
    return %arg0, %c0_i32 : i32, i32
  }
}

</mosaic_0001>

<bundles_post_ra>
// kernel: tpu_custom_call.1
= control target key start
LH: loop header
LB: loop body
LE: loop exit
PB: predicated region body
PF: predicated region fallthrough
CT: control target
= control target key end

     0   :  { %9 = vsyncpa [#allocation4], 0  ;;  %s137_s12 = smov [#allocation3]   ;;  %s194_s0 = inlined_call_operand.hbm [shape: f32[8,768], index: 0, kind: input, shape index: {}]   ;;  %s195_s1 = inlined_call_operand.vmem [shape: f32[1,768], index: 1, kind: input, shape index: {}]   ;;  %s196_s2 = inlined_call_operand.<no memory space> [shape: f32[1,1], index: 2, kind: input, shape index: {}]   ;;  %s197_s3 = inlined_call_operand.vmem [shape: f32[8,1], index: 3, kind: output, shape index: {}]  }
   0x1   :  { %s16_s13 = sshll.u32 %s137_s12, 4  ;;  %s113_s16 = scalar_lea.hbm %s194_s0, 768  ;;  %s17_s13 = int_to_ptr.vmem [resolvable:$true] %s16_s13 }
   0x2   :  { %p114_p0 = scmp.ne.s32.totalorder %s194_s0, %s113_s16  ;;  %p117_p1 = scmp.lt.u32.totalorder %s113_s16, %s194_s0 }
   0x4   :  { %p119_p2 = pnand %p117_p1, %p114_p0 }
   0x6   :  { %122 = shalt.err (!%p119_p2)
}
   0x7   :  { %s123_s21 = scalar_lea.vmem %s17_s13, 768  ;;  %p128_p4 = scmp.lt.s32.totalorder %s17_s13, %s17_s13 }
   0x8   :  { %p124_p3 = scmp.ne.s32.totalorder %s17_s13, %s123_s21  ;;  %p129_p5 = scmp.lt.s32.totalorder %s123_s21, %s123_s21 }
   0xa   :  { %p130_p6 = por %p129_p5, %p128_p4 }
   0xc   :  { %p131_p7 = pnand %p130_p6, %p124_p3 }
   0xe   :  { %134 = shalt.err (!%p131_p7)
}
   0xf   :  { %19 = dma.hbm_to_vmem [thread:$0]  %s194_s0, 768, %s17_s13, [#allocation4]  }
  0x10   :  { %135 = dma.done.wait [#allocation4], 768  }
  0x11   :  { %136 = vsyncadd [#allocation4], 4294966528  ;;  %v27_v0 = vld [vmem:[#allocation3] sm:$0xff]  ;;  %v36_v2 = vld [vmem:[#allocation3 + $0x8] sm:$0xff]  ;;  %v89_v23 = vstv %s196_s2  ;;  %vm99_vm2 = vcmask 7168  }
  0x12   :  { %v106_v1 = vld [vmem:[%s195_s1] ss:$0 sm:$0xff]  ;;  %v107_v4 = vld [vmem:[%s195_s1 + $0x1] ss:$0 sm:$0xff]  ;;  %v46_v5 = vld [vmem:[#allocation3 + $0x10] sm:$0xff] }
  0x13   :  { %v35_v3 = vmul.f32 %v106_v1, %v27_v0  ;;  %v108_v6 = vld [vmem:[%s195_s1 + $0x2] ss:$0 sm:$0xff]  ;;  %v44_v7 = vmul.f32 %v107_v4, %v36_v2  ;;  %v56_v9 = vld [vmem:[#allocation3 + $0x18] sm:$0xff]  ;;  %v109_v10 = vld [vmem:[%s195_s1 + $0x3] ss:$0 sm:$0xff] }
  0x14   :  { %v54_v8 = vmul.f32 %v108_v6, %v46_v5  ;;  %v66_v11 = vld [vmem:[#allocation3 + $0x20] sm:$0xff]  ;;  %v64_v14 = vmul.f32 %v109_v10, %v56_v9  ;;  %v76_v15 = vld [vmem:[#allocation3 + $0x28] sm:$0xff] }
  0x15   :  { %v110_v12 = vld [vmem:[%s195_s1 + $0x4] ss:$0 sm:$0xff]  ;;  %v45_v13 = vadd.f32 %v44_v7, %v35_v3  ;;  %v111_v16 = vld [vmem:[%s195_s1 + $0x5] ss:$0 sm:$0xff] }
  0x16   :  { %v74_v18 = vmul.f32 %v110_v12, %v66_v11  ;;  %v84_v20 = vmul.f32 %v111_v16, %v76_v15 }
  0x17   :  { %v55_v17 = vadd.f32 %v54_v8, %v45_v13 }
  0x19   :  { %v65_v19 = vadd.f32 %v64_v14, %v55_v17 }
  0x1b   :  { %v75_v21 = vadd.f32 %v74_v18, %v65_v19 }
  0x1d   :  { %v85_v22 = vadd.f32 %v84_v20, %v75_v21 }
  0x1f   :  { %86 = vadd.xlane.f32.xlu0 %v85_v22 }
  0xac   :  { %v87_v24 = vpop.xlane.xlu0 %86 }
  0xad   :  { %v90_v25 = vadd.f32 %v89_v23, %v87_v24 }
  0xaf   :  { %vm91_vm0 = vcmp.ge.f32.partialorder %v90_v25, 0.0  ;;  %v92_v26 = vmul.f32 0.1, %v90_v25 }
  0xb1   :  { %v93_v27 = vsel %vm91_vm0, %v90_v25, %v92_v26 }
  0xb2   :  { %v94_v28 = vsub.f32 1.0, %v93_v27 }
  0xb4   :  { %vm95_vm1 = vcmp.ge.f32.partialorder %v94_v28, 0.0  ;;  %v96_v29 = vmul.f32 0.1, %v94_v28 }
  0xb6   :  { %v97_v30 = vsel %vm95_vm1, %v94_v28, %v96_v29 }
  0xb7   :  { %v98_v31 = vsub.f32 1.0, %v97_v30 }
  0xb9   :  { %100 = vst.msk [vmem:[%s197_s3] sm:$0xff] %vm99_vm2, %v98_v31 }
  0xba   :  { %105 = vsyncpa [#allocation4], 1 }

</bundles_post_ra>
